<compile_context>
chip_gen: v6e
topology: v6e:2x2x1
jax: 0.10.0
libtpu: 0.0.40
codegen_flags: <defaults>
</compile_context>

<pallas_src>
import functools

import jax
import jax.numpy as jnp
from jax import lax
from jax.experimental import pallas as pl
from jax.experimental.pallas import tpu as pltpu

_LANE = 128
_SUBLANE = 8
_TARGET_STEP_BYTES = 8 << 20     # aim for ~8 MiB of (in+out) HBM traffic / step
_MIN_ROWS_FOR_SPLIT = 256        # above this, force >=2 grid steps (v7x megacore)


def _round_up(x, m):
    return ((x + m - 1) // m) * m


def _vmem_budget_and_limit():
    """(working-set budget, vmem_limit_bytes) per TPU generation."""
    cap = None
    try:
        info = pltpu.get_tpu_info()
        cap = getattr(info, "vmem_capacity_bytes", None)
    except Exception:
        cap = None
    if cap is None:
        cap = 64 << 20
    if cap >= (100 << 20):          # v5e / v6e: 128 MiB physical VMEM
        return 40 << 20, 80 << 20
    return 20 << 20, 40 << 20       # v7x: 64 MiB physical VMEM


def _pick_tile_rows(rows, lane_width, in_bytes, out_bytes, budget_bytes):
    """Row tile sized by bytes-per-grid-step, bounded by the VMEM budget."""
    # Working set / row: double-buffered in + out tiles plus ~one live f32 temp
    # (intermediates mostly live in vregs, not VMEM).
    per_row_ws = lane_width * (2 * in_bytes + 2 * out_bytes + 4)
    # HBM traffic / row / step (read + write).
    per_row_io = lane_width * (in_bytes + out_bytes)
    max_rows_vmem = max(_SUBLANE, budget_bytes // per_row_ws)
    target_rows = max(_SUBLANE, _TARGET_STEP_BYTES // per_row_io)
    tile = min(rows, max_rows_vmem, target_rows)
    if tile >= rows:
        # Whole input fits one step; split in two for medium inputs so both
        # v7x TensorCores participate and DMA/compute pipeline.
        if rows >= _MIN_ROWS_FOR_SPLIT:
            return _round_up(pl.cdiv(rows, 2), _SUBLANE)
        return rows
    return max(_SUBLANE, (tile // _SUBLANE) * _SUBLANE)


# ---------------------------------------------------------------------------
# Kernels
# ---------------------------------------------------------------------------
def _general_kernel(x_ref, *args, eps, inv_dim, affine):
    if affine:
        w_ref, o_ref = args
    else:
        (o_ref,) = args
    x = x_ref[...].astype(jnp.float32)                       # x.float()
    # Padded lanes (if any) are zero, so sum/true_dim == mean over true dim.
    ms = jnp.sum(x * x, axis=-1, keepdims=True) * inv_dim
    y = x * lax.rsqrt(ms + eps)
    if affine:
        y = y * w_ref[...].astype(jnp.float32)
    o_ref[...] = y.astype(o_ref.dtype)                       # single downcast


def _packed_kernel(x_ref, seg_ref, *args, eps, affine):
    # x_ref: (T, 128); each 128-lane row holds 128//dim logical rows laid out
    # as contiguous dim-wide segments.  seg_ref: bf16 (128,128) block-diagonal
    # matrix with 1/dim inside each segment (built once, resident in VMEM).
    if affine:
        w_ref, o_ref = args
    else:
        (o_ref,) = args

    x = x_ref[...].astype(jnp.float32)
    sq = x * x
    seg = seg_ref[...]

    # 3-term bf16 split of sq -> ~f32-exact segment mean in 3 MXU passes
    # (seg entries 1/dim, dim a power of two, are exact in bf16), vs 6 passes
    # for a Precision.HIGHEST f32 matmul.  One matmul both reduces each
    # segment and broadcasts the mean back to every lane of that segment.
    hi = sq.astype(jnp.bfloat16)
    r1 = sq - hi.astype(jnp.float32)
    mid = r1.astype(jnp.bfloat16)
    lo = (r1 - mid.astype(jnp.float32)).astype(jnp.bfloat16)
    dn = (((1,), (0,)), ((), ()))
    ms = (lax.dot_general(hi, seg, dn, preferred_element_type=jnp.float32)
          + lax.dot_general(mid, seg, dn, preferred_element_type=jnp.float32)
          + lax.dot_general(lo, seg, dn, preferred_element_type=jnp.float32))

    y = x * lax.rsqrt(ms + eps)
    if affine:
        y = y * w_ref[...].astype(jnp.float32)
    o_ref[...] = y.astype(o_ref.dtype)


# ---------------------------------------------------------------------------
# Wrapper
# ---------------------------------------------------------------------------
def rmsnorm(x: jax.Array, weight: jax.Array | None, *, eps: float = 1e-6) -> jax.Array:
    """RMSNorm over the last axis of `x` (matches the PyTorch module forward)."""
    orig_shape = x.shape
    dim = orig_shape[-1]
    rows = 1
    for s in orig_shape[:-1]:
        rows *= s
    if rows == 0 or dim == 0:
        return x

    affine = weight is not None
    budget, vmem_limit = _vmem_budget_and_limit()
    itemsize = jnp.dtype(x.dtype).itemsize
    compiler_params = pltpu.CompilerParams(
        dimension_semantics=("parallel",),
        vmem_limit_bytes=vmem_limit,
    )
    cost = pl.CostEstimate(
        flops=int(5 * rows * dim),
        transcendentals=int(rows),
        bytes_accessed=int(2 * rows * dim * itemsize),
    )

    # ---- lane-packed path for small dims (dim divides 128, e.g. dim=32) ----
    if dim < _LANE and _LANE % dim == 0:
        pack = _LANE // dim
        rows_pad = _round_up(rows, pack)
        x2d = x.reshape(rows, dim)
        if rows_pad != rows:
            # pad a handful of rows so the packed layout stays lane-dense
            x2d = jnp.pad(x2d, ((0, rows_pad - rows), (0, 0)))
        rows_p = rows_pad // pack
        xp = x2d.reshape(rows_p, _LANE)

        tile = _pick_tile_rows(rows_p, _LANE, itemsize, itemsize, budget)
        grid = (pl.cdiv(rows_p, tile),)

        # block-diagonal segment-mean matrix, hoisted out of the grid body
        lane_seg = jnp.arange(_LANE, dtype=jnp.int32) // dim
        seg = ((lane_seg[:, None] == lane_seg[None, :]).astype(jnp.float32)
               * jnp.float32(1.0 / dim)).astype(jnp.bfloat16)

        kernel = functools.partial(_packed_kernel, eps=float(eps), affine=affine)
        in_specs = [
            pl.BlockSpec((tile, _LANE), lambda i: (i, 0)),
            pl.BlockSpec((_LANE, _LANE), lambda i: (0, 0)),   # resident constant
        ]
        call_args = [xp, seg]
        if affine:
            w_tiled = jnp.tile(weight.reshape(-1), pack).reshape(1, _LANE)
            in_specs.append(pl.BlockSpec((1, _LANE), lambda i: (0, 0)))
            call_args.append(w_tiled)

        outp = pl.pallas_call(
            kernel,
            out_shape=jax.ShapeDtypeStruct((rows_p, _LANE), x.dtype),
            grid_spec=pltpu.PrefetchScalarGridSpec(
                num_scalar_prefetch=0,
                grid=grid,
                in_specs=in_specs,
                out_specs=pl.BlockSpec((tile, _LANE), lambda i: (i, 0)),
            ),
            compiler_params=compiler_params,
            cost_estimate=cost,
        )(*call_args)

        out2d = outp.reshape(rows_pad, dim)
        if rows_pad != rows:
            out2d = out2d[:rows]
        return out2d.reshape(orig_shape)

    # ---- general path: pad lane dim to a multiple of 128 (lane-dense I/O) ----
    dim_p = _round_up(dim, _LANE)
    x2d = x.reshape(rows, dim)
    w2d = weight.reshape(1, dim) if affine else None
    if dim_p != dim:
        x2d = jnp.pad(x2d, ((0, 0), (0, dim_p - dim)))
        if affine:
            w2d = jnp.pad(w2d, ((0, 0), (0, dim_p - dim)))

    tile = _pick_tile_rows(rows, dim_p, itemsize, itemsize, budget)
    grid = (pl.cdiv(rows, tile),)

    kernel = functools.partial(_general_kernel, eps=float(eps),
                               inv_dim=1.0 / float(dim), affine=affine)
    in_specs = [pl.BlockSpec((tile, dim_p), lambda i: (i, 0))]
    call_args = [x2d]
    if affine:
        in_specs.append(pl.BlockSpec((1, dim_p), lambda i: (0, 0)))
        call_args.append(w2d)

    out2d = pl.pallas_call(
        kernel,
        out_shape=jax.ShapeDtypeStruct((rows, dim_p), x.dtype),
        grid_spec=pltpu.PrefetchScalarGridSpec(
            num_scalar_prefetch=0,
            grid=grid,
            in_specs=in_specs,
            out_specs=pl.BlockSpec((tile, dim_p), lambda i: (i, 0)),
        ),
        compiler_params=compiler_params,
        cost_estimate=cost,
    )(*call_args)
    if dim_p != dim:
        out2d = out2d[:, :dim]
    return out2d.reshape(orig_shape)


# ---------------------------------------------------------------------------
# Demo / correctness check
# ---------------------------------------------------------------------------
if __name__ == "__main__":
    eps = 1e-6
    key = jax.random.PRNGKey(0)
    k1, k2, k3 = jax.random.split(key, 3)

    def ref_rmsnorm(x, w, eps):
        xf = x.astype(jnp.float32)
        y = (xf * lax.rsqrt(jnp.mean(xf * xf, axis=-1, keepdims=True) + eps)).astype(x.dtype)
        if w is not None:
            y = y * w.astype(y.dtype)
        return y

    # Module config: dim=32, eps=1e-6, elementwise_affine=True -> packed path.
    dim = 32
    weight = jnp.ones((dim,), dtype=jnp.float32)          # nn.Parameter(torch.ones(dim))
    x = jax.random.normal(k1, (2, 8, dim), dtype=jnp.float32)

    out = rmsnorm(x, weight, eps=eps)
    jax.block_until_ready(out)
    assert out.shape == x.shape and out.dtype == x.dtype
    assert jnp.allclose(out, ref_rmsnorm(x, weight, eps), atol=1e-5, rtol=1e-5)

    # elementwise_affine=False (no dummy weight, no extra DMA).
    out_na = rmsnorm(x, None, eps=eps)
    jax.block_until_ready(out_na)
    assert jnp.allclose(out_na, ref_rmsnorm(x, None, eps), atol=1e-5, rtol=1e-5)

    # Ragged row count (rows=15, pack=4) -> packed path with row padding.
    w3 = (1.0 + 0.05 * jnp.cos(jnp.arange(dim))).astype(jnp.float32)
    x3 = jax.random.normal(k3, (3, 5, dim), dtype=jnp.float32)
    out3 = rmsnorm(x3, w3, eps=eps)
    jax.block_until_ready(out3)
    assert out3.shape == x3.shape
    assert jnp.allclose(out3, ref_rmsnorm(x3, w3, eps), atol=1e-5, rtol=1e-5)

    # General lane-dense path (dim multiple of 128) with a non-trivial weight.
    dim2 = 256
    w2 = (1.0 + 0.1 * jnp.sin(jnp.arange(dim2))).astype(jnp.float32)
    x2 = jax.random.normal(k2, (2, 8, dim2), dtype=jnp.float32)
    out2 = rmsnorm(x2, w2, eps=eps)
    jax.block_until_ready(out2)
    assert jnp.allclose(out2, ref_rmsnorm(x2, w2, eps), atol=1e-5, rtol=1e-5)

    print("KERNEL_OK")
</pallas_src>

<mosaic_0001>
module attributes {stable_mosaic.version = 11 : i64} {
  func.func @_packed_kernel(%arg0: i32, %arg1: memref<4x128xf32, #tpu.memory_space<vmem>>, %arg2: memref<128x128xbf16, #tpu.memory_space<vmem>>, %arg3: memref<1x128xf32, #tpu.memory_space<vmem>>, %arg4: memref<4x128xf32, #tpu.memory_space<vmem>>) attributes {dimension_semantics = [#tpu.dimension_semantics<parallel>], iteration_bounds = array<i64: 1>, scalar_prefetch = 0 : i64, scratch_operands = 0 : i64, tpu.core_type = #tpu.core_type<tc>, window_params = [{transform_indices = @transform_0, window_bounds = array<i64: 4, 128>}, {pipeline_mode = #tpu.pipeline_mode<synchronous>, transform_indices = @transform_1, window_bounds = array<i64: 128, 128>}, {pipeline_mode = #tpu.pipeline_mode<synchronous>, transform_indices = @transform_2, window_bounds = array<i64: 1, 128>}, {transform_indices = @transform_3, window_bounds = array<i64: 4, 128>}]} {
    %c0 = arith.constant 0 : index
    %c0_0 = arith.constant 0 : index
    %0 = vector.load %arg1[%c0, %c0_0] : memref<4x128xf32, #tpu.memory_space<vmem>>, vector<4x128xf32>
    %1 = arith.mulf %0, %0 : vector<4x128xf32>
    %c0_1 = arith.constant 0 : index
    %c0_2 = arith.constant 0 : index
    %2 = vector.load %arg2[%c0_1, %c0_2] : memref<128x128xbf16, #tpu.memory_space<vmem>>, vector<128x128xbf16>
    %3 = arith.truncf %1 : vector<4x128xf32> to vector<4x128xbf16>
    %4 = arith.extf %3 : vector<4x128xbf16> to vector<4x128xf32>
    %5 = arith.subf %1, %4 : vector<4x128xf32>
    %6 = arith.truncf %5 : vector<4x128xf32> to vector<4x128xbf16>
    %7 = arith.extf %6 : vector<4x128xbf16> to vector<4x128xf32>
    %8 = arith.subf %5, %7 : vector<4x128xf32>
    %9 = arith.truncf %8 : vector<4x128xf32> to vector<4x128xbf16>
    %cst = arith.constant dense<0.000000e+00> : vector<4x128xf32>
    %10 = tpu.matmul %3, %2, %cst {dimension_numbers = #tpu.dot_dimension_numbers<[1], [0], [0], [1], [0, 0, 1, 1], [], []>} : vector<4x128xbf16>, vector<128x128xbf16>, vector<4x128xf32> -> vector<4x128xf32>
    %cst_3 = arith.constant dense<0.000000e+00> : vector<4x128xf32>
    %11 = tpu.matmul %6, %2, %cst_3 {dimension_numbers = #tpu.dot_dimension_numbers<[1], [0], [0], [1], [0, 0, 1, 1], [], []>} : vector<4x128xbf16>, vector<128x128xbf16>, vector<4x128xf32> -> vector<4x128xf32>
    %12 = arith.addf %10, %11 : vector<4x128xf32>
    %cst_4 = arith.constant dense<0.000000e+00> : vector<4x128xf32>
    %13 = tpu.matmul %9, %2, %cst_4 {dimension_numbers = #tpu.dot_dimension_numbers<[1], [0], [0], [1], [0, 0, 1, 1], [], []>} : vector<4x128xbf16>, vector<128x128xbf16>, vector<4x128xf32> -> vector<4x128xf32>
    %14 = arith.addf %12, %13 : vector<4x128xf32>
    %cst_5 = arith.constant 9.99999997E-7 : f32
    %15 = vector.broadcast %cst_5 : f32 to vector<4x128xf32>
    %16 = arith.addf %14, %15 : vector<4x128xf32>
    %17 = math.rsqrt %16 : vector<4x128xf32>
    %18 = arith.mulf %0, %17 : vector<4x128xf32>
    %c0_6 = arith.constant 0 : index
    %c0_7 = arith.constant 0 : index
    %19 = vector.load %arg3[%c0_6, %c0_7] : memref<1x128xf32, #tpu.memory_space<vmem>>, vector<1x128xf32>
    %20 = vector.broadcast %19 : vector<1x128xf32> to vector<4x128xf32>
    %21 = arith.mulf %18, %20 : vector<4x128xf32>
    %c0_8 = arith.constant 0 : index
    %c0_9 = arith.constant 0 : index
    %22 = vector.load %arg4[%c0_8, %c0_9] : memref<4x128xf32, #tpu.memory_space<vmem>>, vector<4x128xf32>
    tpu.vector_store %arg4[%c0_8, %c0_9], %21 {strides = array<i32>} : memref<4x128xf32, #tpu.memory_space<vmem>>, vector<4x128xf32>,
    return
  }
  func.func @transform_0(%arg0: i32) -> (i32, i32) {
    %c0_i32 = arith.constant 0 : i32
    %c0_i32_0 = arith.constant 0 : i32
    return %arg0, %c0_i32 : i32, i32
  }
  func.func @transform_1(%arg0: i32) -> (i32, i32) {
    %c0_i32 = arith.constant 0 : i32
    %c0_i32_0 = arith.constant 0 : i32
    %c0_i32_1 = arith.constant 0 : i32
    return %c0_i32, %c0_i32_0 : i32, i32
  }
  func.func @transform_2(%arg0: i32) -> (i32, i32) {
    %c0_i32 = arith.constant 0 : i32
    %c0_i32_0 = arith.constant 0 : i32
    %c0_i32_1 = arith.constant 0 : i32
    return %c0_i32, %c0_i32_0 : i32, i32
  }
  func.func @transform_3(%arg0: i32) -> (i32, i32) {
    %c0_i32 = arith.constant 0 : i32
    %c0_i32_0 = arith.constant 0 : i32
    return %arg0, %c0_i32 : i32, i32
  }
}

</mosaic_0001>

<bundles_post_ra>
// kernel: tpu_custom_call.1
= control target key start
LH: loop header
LB: loop body
LE: loop exit
PB: predicated region body
PF: predicated region fallthrough
CT: control target
= control target key end

     0   :  { %8 = vsyncpa [#allocation3], 0  ;;  %s517_s0 = inlined_call_operand.hbm [shape: f32[4,128], index: 0, kind: input, shape index: {}]   ;;  %s518_s1 = inlined_call_operand.hbm [shape: bf16[128,128], index: 1, kind: input, shape index: {}]   ;;  %s519_s2 = inlined_call_operand.vmem [shape: f32[1,128], index: 2, kind: input, shape index: {}]   ;;  %s520_s3 = inlined_call_operand.hbm [shape: f32[4,128], index: 3, kind: output, shape index: {}]  }
   0x1   :  { %9 = vsyncpa [#allocation6], 0 }
   0x2   :  { %10 = vsyncpa [#allocation4], 0  ;;  %s443_s12 = smov [#allocation2]   ;;  %s444_s14 = smov [#allocation5]  }
   0x3   :  { %s17_s13 = sshll.u32 %s443_s12, 4  ;;  %s26_s15 = sshll.u32 %s444_s14, 4  ;;  %s18_s13 = int_to_ptr.vmem [resolvable:$true] %s17_s13  ;;  %s27_s15 = int_to_ptr.vmem [resolvable:$true] %s26_s15 }
   0x4   :  { %s385_s16 = scalar_lea.vmem %s18_s13, 64  ;;  %p390_p1 = scmp.lt.s32.totalorder %s18_s13, %s18_s13 }
   0x5   :  { %p386_p0 = scmp.ne.s32.totalorder %s18_s13, %s385_s16  ;;  %p391_p2 = scmp.lt.s32.totalorder %s385_s16, %s385_s16 }
   0x7   :  { %p392_p3 = por %p391_p2, %p390_p1 }
   0x9   :  { %p393_p4 = pnand %p392_p3, %p386_p0 }
   0xb   :  { %396 = shalt.err (!%p393_p4)
}
   0xc   :  { %20 = dma.hbm_to_vmem [thread:$0]  %s517_s0, 64, %s18_s13, [#allocation3]  }
   0xd   :  { %s405_s19 = scalar_lea.vmem %s27_s15, 1024  ;;  %p410_p6 = scmp.lt.s32.totalorder %s27_s15, %s27_s15 }
   0xe   :  { %p406_p5 = scmp.ne.s32.totalorder %s27_s15, %s405_s19  ;;  %p411_p7 = scmp.lt.s32.totalorder %s405_s19, %s405_s19 }
  0x10   :  { %p412_p8 = por %p411_p7, %p410_p6 }
  0x12   :  { %p413_p9 = pnand %p412_p8, %p406_p5 }
  0x14   :  { %416 = shalt.err (!%p413_p9)
}
  0x15   :  { %s445_s20 = smov 64   ;;  %s446_s21 = smov 4  }
  0x16   :  { %32 = dma.hbm_to_vmem [thread:$0]  %s518_s1, 1024, %s27_s15, [#allocation6], %s445_s20, %s445_s20, %s446_s21  }
  0x17   :  { %437 = dma.done.wait [#allocation3], 64  }
  0x18   :  { %438 = vsyncadd [#allocation3], 4294967232 }
  0x19   :  { %439 = dma.done.wait [#allocation6], 1024  }
  0x1a   :  { %440 = vsyncadd [#allocation6], 4294966272  ;;  %v447_v0 = vmov 0.0   ;;  %vm448_vm0 = vmmov 0   ;;  %v367_v1 = vld [vmem:[#allocation5 + $0x38] sm:$0xff]   ;;  %v368_v2 = vld [vmem:[#allocation5 + $0x30] sm:$0xff]  }
  0x1b   :  { %300 = vmatprep.subr.bf16.mxu0 %v447_v0  ;;  %320 = vmatprep.subr.bf16.mxu1 %v447_v0  ;;  %v369_v3 = vld [vmem:[#allocation5 + $0x28] sm:$0xff]   ;;  %v370_v4 = vld [vmem:[#allocation5 + $0x20] sm:$0xff]   ;;  %v486_v5 = vld [vmem:[#allocation2] sm:$0xf]  ;;  %s449_s24 = smov [#allocation7]  }
  0x1c   :  { %316 = vmatprep.mubr.msk.bf16.mxu0 %vm448_vm0, %v447_v0  ;;  %336 = vmatprep.mubr.msk.bf16.mxu1 %vm448_vm0, %v447_v0  ;;  %v43_v6 = vmul.f32 %v486_v5, %v486_v5  ;;  %v371_v7 = vld [vmem:[#allocation5 + $0x18] sm:$0xff]   ;;  %v372_v9 = vld [vmem:[#allocation5 + $0x10] sm:$0xff]   ;;  %v373_v11 = vld [vmem:[#allocation5 + $0x8] sm:$0xff]   ;;  %s254_s25 = sshll.u32 %s449_s24, 4  ;;  %s255_s25 = int_to_ptr.vmem [resolvable:$true] %s254_s25 }
  0x1d   :  { %301 = vmatpush3.bf16.msra.mxu0 %v367_v1  ;;  %321 = vmatpush3.bf16.msra.mxu1 %v367_v1  ;;  %v374_v13 = vld [vmem:[#allocation5] sm:$0xff]   ;;  %v272_v34 = vld [vmem:[%s519_s2] ss:$0 sm:$0xff]  ;;  %s417_s26 = scalar_lea.vmem %s255_s25, 64  ;;  %p422_p11 = scmp.lt.s32.totalorder %s255_s25, %s255_s25 }
  0x1e   :  { %302 = vmatprep.subr.bf16.mxu0 %v447_v0  ;;  %322 = vmatprep.subr.bf16.mxu1 %v447_v0  ;;  %v60_v8 = vpack.c.bf16 %v43_v6, %v43_v6  ;;  %p418_p10 = scmp.ne.s32.totalorder %s255_s25, %s417_s26  ;;  %p423_p12 = scmp.lt.s32.totalorder %s417_s26, %s417_s26 }
  0x20   :  { %v61_v10 = vunpack.c.l.bf16 %v60_v8  ;;  %p424_p13 = por %p423_p12, %p422_p11 }
  0x21   :  { %303 = vmatpush3.bf16.msra.mxu0 %v368_v2  ;;  %323 = vmatpush3.bf16.msra.mxu1 %v368_v2 }
  0x22   :  { %304 = vmatprep.subr.bf16.mxu0 %v447_v0  ;;  %324 = vmatprep.subr.bf16.mxu1 %v447_v0  ;;  %v62_v12 = vsub.f32 %v43_v6, %v61_v10  ;;  %p425_p0 = pnand %p424_p13, %p418_p10 }
  0x24   :  { %v63_v14 = vpack.c.bf16 %v62_v12, %v62_v12 }
  0x25   :  { %305 = vmatpush3.bf16.msra.mxu0 %v369_v3  ;;  %325 = vmatpush3.bf16.msra.mxu1 %v369_v3 }
  0x26   :  { %306 = vmatprep.subr.bf16.mxu0 %v447_v0  ;;  %326 = vmatprep.subr.bf16.mxu1 %v447_v0  ;;  %v64_v15 = vunpack.c.l.bf16 %v63_v14 }
  0x28   :  { %v65_v16 = vsub.f32 %v62_v12, %v64_v15 }
  0x29   :  { %307 = vmatpush3.bf16.msra.mxu0 %v370_v4  ;;  %327 = vmatpush3.bf16.msra.mxu1 %v370_v4 }
  0x2a   :  { %308 = vmatprep.subr.bf16.mxu0 %v447_v0  ;;  %328 = vmatprep.subr.bf16.mxu1 %v447_v0  ;;  %v66_v17 = vpack.c.bf16 %v65_v16, %v65_v16 }
  0x2d   :  { %309 = vmatpush3.bf16.msra.mxu0 %v371_v7  ;;  %329 = vmatpush3.bf16.msra.mxu1 %v371_v7 }
  0x2e   :  { %310 = vmatprep.subr.bf16.mxu0 %v447_v0  ;;  %330 = vmatprep.subr.bf16.mxu1 %v447_v0 }
  0x31   :  { %311 = vmatpush3.bf16.msra.mxu0 %v372_v9  ;;  %331 = vmatpush3.bf16.msra.mxu1 %v372_v9 }
  0x32   :  { %312 = vmatprep.subr.bf16.mxu0 %v447_v0  ;;  %332 = vmatprep.subr.bf16.mxu1 %v447_v0 }
  0x35   :  { %313 = vmatpush3.bf16.msra.mxu0 %v373_v11  ;;  %333 = vmatpush3.bf16.msra.mxu1 %v373_v11 }
  0x36   :  { %314 = vmatprep.subr.bf16.mxu0 %v447_v0  ;;  %334 = vmatprep.subr.bf16.mxu1 %v447_v0 }
  0x39   :  { %315 = vmatpush3.bf16.msra.mxu0 %v374_v13  ;;  %335 = vmatpush3.bf16.msra.mxu1 %v374_v13 }
  0x3a   :  { %340 = vmatprep.subr.bf16.mxu0 %v447_v0 }
  0x3c   :  { %317 = vmatmul.mubr.bf16.vlgmr.msra.gmra.mxu0 %v63_v14  ;;  %337 = vmatmul.mubr.bf16.vlgmr.msra.gmra.mxu1 %v60_v8 }
  0x3d   :  { %341 = vmatpush3.bf16.msra.mxu0 %v367_v1  ;;  %356 = vmatprep.mubr.msk.bf16.mxu0 %vm448_vm0, %v447_v0 }
  0x3e   :  { %342 = vmatprep.subr.bf16.mxu0 %v447_v0 }
  0x41   :  { %343 = vmatpush3.bf16.msra.mxu0 %v368_v2 }
  0x42   :  { %344 = vmatprep.subr.bf16.mxu0 %v447_v0 }
  0x45   :  { %345 = vmatpush3.bf16.msra.mxu0 %v369_v3 }
  0x46   :  { %346 = vmatprep.subr.bf16.mxu0 %v447_v0 }
  0x49   :  { %347 = vmatpush3.bf16.msra.mxu0 %v370_v4 }
  0x4a   :  { %348 = vmatprep.subr.bf16.mxu0 %v447_v0 }
  0x4d   :  { %349 = vmatpush3.bf16.msra.mxu0 %v371_v7 }
  0x4e   :  { %350 = vmatprep.subr.bf16.mxu0 %v447_v0 }
  0x51   :  { %351 = vmatpush3.bf16.msra.mxu0 %v372_v9 }
  0x52   :  { %352 = vmatprep.subr.bf16.mxu0 %v447_v0 }
  0x55   :  { %353 = vmatpush3.bf16.msra.mxu0 %v373_v11 }
  0x56   :  { %354 = vmatprep.subr.bf16.mxu0 %v447_v0 }
  0x59   :  { %355 = vmatpush3.bf16.msra.mxu0 %v374_v13 }
  0x5c   :  { %357 = vmatmul.mubr.bf16.vlgmr.msra.gmra.mxu0 %v66_v17 }
  0xfc   :  { %v149_v18 = vpop.f32.mrf.mxu0  ;;  %v189_v19 = vpop.f32.mrf.mxu1 }
  0xfd   :  { %v190_v26 = vadd.f32 %v189_v19, %v149_v18 }
  0xfe   :  { %v318_v20 = vpop.f32.mrf.mxu0  ;;  %v338_v21 = vpop.f32.mrf.mxu1 }
 0x100   :  { %v152_v22 = vpop.f32.mrf.mxu0  ;;  %v192_v23 = vpop.f32.mrf.mxu1 }
 0x102   :  { %v319_v24 = vpop.f32.mrf.mxu0  ;;  %v339_v25 = vpop.f32.mrf.mxu1 }
 0x11c   :  { %v229_v27 = vpop.f32.mrf.mxu0 }
 0x11d   :  { %v235_v28 = vadd.f32 %v229_v27, %v190_v26 }
 0x11e   :  { %v358_v29 = vpop.f32.mrf.mxu0 }
 0x11f   :  { %v236_v30 = vadd.f32 1e-06, %v235_v28 }
 0x120   :  { %v232_v31 = vpop.f32.mrf.mxu0 }
 0x121   :  { %375 = vrsqrt.f32 %v236_v30 }
 0x122   :  { %v359_v32 = vpop.f32.mrf.mxu0 }
 0x12e   :  { %v376_v33 = vpop.eup %375 }
 0x12f   :  { %v238_v35 = vmul.f32 %v376_v33, %v486_v5 }
 0x131   :  { %v246_v36 = vmul.f32 %v272_v34, %v238_v35 }
 0x133   :  { %247 = vst [vmem:[#allocation7] sm:$0xf] %v246_v36 }
 0x134   :  { %428 = shalt.err (!%p425_p0)
}
 0x135   :  { %257 = dma.vmem_to_hbm [thread:$0]  %s255_s25, 64, %s520_s3, [#allocation4]  }
 0x136   :  { %441 = dma.done.wait [#allocation4], 64  }
 0x137   :  { %442 = vsyncadd [#allocation4], 4294967232 }
 0x138   :  { %261 = vsyncpa [#allocation3], 1 }
 0x139   :  { %262 = vsyncpa [#allocation6], 1 }
 0x13a   :  { %263 = vsyncpa [#allocation4], 1 }

</bundles_post_ra>
